<compile_context>
chip_gen: v7x
topology: tpu7x:2x2x1
jax: 0.10.0
libtpu: 0.0.40
codegen_flags: <defaults>
</compile_context>

<pallas_src>
import jax
import jax.numpy as jnp
from jax.experimental import pallas as pl
from jax.experimental.pallas import tpu as pltpu


def _round_up(v, m):
    return -(-v // m) * m


def sn_classifier_kernel(x_ref, w1_ref, b1_ref, w2_ref, b2_ref, w3_ref, b3_ref, o_ref):
    # x_ref: (n_tile, C, H*W) NCHW-native flat block; w*: (in, out); b*: (1, out)
    # o_ref: (n_tile, out_features)
    x = x_ref[...].astype(jnp.float32)

    # AvgPool2d(13) over a 13x13 input == mean over all spatial positions.
    # Spatial sits on the lane axis -> XLU lane reduce; result (n_tile, C) has C
    # on lanes, ready for the fc1 matmul.
    pooled = jnp.mean(x, axis=-1)

    # fc1 + ReLU   (dropout == identity in eval mode)
    h1 = jnp.dot(pooled, w1_ref[...], preferred_element_type=jnp.float32) + b1_ref[...]
    h1 = jnp.maximum(h1, 0.0)

    # fc2 + ReLU
    h2 = jnp.dot(h1, w2_ref[...], preferred_element_type=jnp.float32) + b2_ref[...]
    h2 = jnp.maximum(h2, 0.0)

    # fc3 + log_softmax along the class axis (numerically stable, max-shifted)
    logits = jnp.dot(h2, w3_ref[...], preferred_element_type=jnp.float32) + b3_ref[...]
    m = jnp.max(logits, axis=-1, keepdims=True)
    shifted = logits - m
    lse = jnp.log(jnp.sum(jnp.exp(shifted), axis=-1, keepdims=True))
    o_ref[...] = (shifted - lse).astype(o_ref.dtype)


def sn_classifier_forward(x_nchw, params, *, n_tile_max=128):
    """x_nchw: (N, C, 13, 13) float32. params: dict of (in, out) weights and (1, out) biases."""
    n, c, h, w = x_nchw.shape
    assert h == 13 and w == 13, "AvgPool2d(13) expects 13x13 spatial input"
    hw = h * w

    # NCHW -> (N, C, H*W): a free, contiguous view (no transpose / extra HBM pass).
    x_flat = x_nchw.reshape(n, c, hw)

    w1, b1 = params["w1"], params["b1"]
    w2, b2 = params["w2"], params["b2"]
    w3, b3 = params["w3"], params["b3"]
    h0, h1_ = w1.shape[1], w2.shape[1]
    out_features = w3.shape[1]

    # --- batch tiling --------------------------------------------------------
    # Output block is (n_tile, out_features): its second-to-last dim must be a
    # multiple of 8 unless it spans the full array, so round the tile / batch
    # padding to multiples of 8.
    if n >= n_tile_max:
        n_tile = n_tile_max
    else:
        n_tile = max(8, _round_up(n, 8))
    n_pad = _round_up(n, n_tile)
    if n_pad != n:
        # Zero padding is safe: padded rows produce finite log-softmax rows
        # (bias-only logits) and are sliced away below.
        x_flat = jnp.pad(x_flat, ((0, n_pad - n), (0, 0), (0, 0)))
    grid = (n_pad // n_tile,)

    # --- explicit VMEM budget (double-buffered blocks + weights + headroom) ---
    f32b = 4
    x_blk_bytes = n_tile * _round_up(c, 8) * _round_up(hw, 128) * f32b
    out_blk_bytes = _round_up(n_tile, 8) * _round_up(out_features, 128) * f32b
    wts_bytes = (
        _round_up(c, 8) * _round_up(h0, 128)
        + _round_up(h0, 8) * _round_up(h1_, 128)
        + _round_up(h1_, 8) * _round_up(out_features, 128)
        + 8 * (_round_up(h0, 128) + _round_up(h1_, 128) + _round_up(out_features, 128))
    ) * f32b
    vmem_limit = int(2 * x_blk_bytes + 2 * wts_bytes + 2 * out_blk_bytes + (8 << 20))

    # --- cost estimate for the surrounding XLA scheduler ----------------------
    flops = 2 * n * (c * h0 + h0 * h1_ + h1_ * out_features) + n * c * hw
    transcendentals = n * out_features  # exp in log_softmax
    bytes_accessed = (
        n * c * hw
        + c * h0 + h0 * h1_ + h1_ * out_features
        + h0 + h1_ + out_features
        + n * out_features
    ) * f32b

    out_padded = pl.pallas_call(
        sn_classifier_kernel,
        out_shape=jax.ShapeDtypeStruct((n_pad, out_features), jnp.float32),
        grid_spec=pltpu.PrefetchScalarGridSpec(
            num_scalar_prefetch=0,
            grid=grid,
            in_specs=[
                pl.BlockSpec((n_tile, c, hw), lambda i: (i, 0, 0)),   # x block
                pl.BlockSpec((c, h0), lambda i: (0, 0)),              # w1 (full)
                pl.BlockSpec((1, h0), lambda i: (0, 0)),              # b1
                pl.BlockSpec((h0, h1_), lambda i: (0, 0)),            # w2
                pl.BlockSpec((1, h1_), lambda i: (0, 0)),             # b2
                pl.BlockSpec((h1_, out_features), lambda i: (0, 0)),  # w3
                pl.BlockSpec((1, out_features), lambda i: (0, 0)),    # b3
            ],
            out_specs=pl.BlockSpec((n_tile, out_features), lambda i: (i, 0)),
        ),
        compiler_params=pltpu.CompilerParams(
            dimension_semantics=("parallel",),   # shard batch across TCs on v7x
            vmem_limit_bytes=vmem_limit,
        ),
        cost_estimate=pl.CostEstimate(
            flops=flops,
            transcendentals=transcendentals,
            bytes_accessed=bytes_accessed,
        ),
    )(x_flat, w1, b1, w2, b2, w3, b3)

    return out_padded[:n] if n_pad != n else out_padded


def init_params(key, in_features, hidden_units, out_features, mean=0.0, std=0.02, bias=0.0):
    """normal_(mean, std) weights + constant_(bias) biases, mirroring the init_params path.
    Weights are stored transposed relative to torch (in, out) so the kernel does x @ W + b."""
    k1, k2, k3 = jax.random.split(key, 3)
    h0, h1 = hidden_units
    return {
        "w1": mean + std * jax.random.normal(k1, (in_features, h0), jnp.float32),
        "b1": jnp.full((1, h0), bias, jnp.float32),
        "w2": mean + std * jax.random.normal(k2, (h0, h1), jnp.float32),
        "b2": jnp.full((1, h1), bias, jnp.float32),
        "w3": mean + std * jax.random.normal(k3, (h1, out_features), jnp.float32),
        "b3": jnp.full((1, out_features), bias, jnp.float32),
    }


def _reference_forward(x_nchw, params):
    """Pure-JAX reference (eval mode: dropout == identity)."""
    n, c, h, w = x_nchw.shape
    pooled = jnp.mean(x_nchw.reshape(n, c, h * w), axis=-1)
    h1 = jnp.maximum(pooled @ params["w1"] + params["b1"], 0.0)
    h2 = jnp.maximum(h1 @ params["w2"] + params["b2"], 0.0)
    logits = h2 @ params["w3"] + params["b3"]
    return jax.nn.log_softmax(logits, axis=-1)


if __name__ == "__main__":
    # Small shapes consistent with the module: in_features = channels, spatial must
    # be 13x13 for the AvgPool2d(13) -> squeeze -> squeeze path.
    C = 32
    hidden_units = [64, 32]
    out_features = 10

    key = jax.random.PRNGKey(0)
    kx1, kx2, kp = jax.random.split(key, 3)
    params = init_params(kp, C, hidden_units, out_features, mean=0.0, std=0.02, bias=0.0)

    ok = True

    # Case 1: tiny batch (single grid step, tile == full batch).
    x1 = jax.random.normal(kx1, (8, C, 13, 13), jnp.float32)
    out1 = jax.block_until_ready(sn_classifier_forward(x1, params))
    assert out1.shape == (8, out_features)
    ok &= bool(jnp.all(jnp.abs(jnp.sum(jnp.exp(out1), axis=1) - 1.0) < 1e-4))
    ok &= bool(jnp.max(jnp.abs(out1 - _reference_forward(x1, params))) < 1e-3)

    # Case 2: batch that exercises the grid, multiple tiles, and padding (200 -> 256).
    x2 = jax.random.normal(kx2, (200, C, 13, 13), jnp.float32)
    out2 = jax.block_until_ready(sn_classifier_forward(x2, params, n_tile_max=64))
    assert out2.shape == (200, out_features)
    ok &= bool(jnp.all(jnp.abs(jnp.sum(jnp.exp(out2), axis=1) - 1.0) < 1e-4))
    ok &= bool(jnp.max(jnp.abs(out2 - _reference_forward(x2, params))) < 1e-3)

    assert ok
    print("KERNEL_OK")
</pallas_src>

<mosaic_0001>
module attributes {stable_mosaic.version = 11 : i64} {
  func.func @sn_classifier_kernel(%arg0: i32, %arg1: memref<8x32x169xf32, #tpu.memory_space<vmem>>, %arg2: memref<32x64xf32, #tpu.memory_space<vmem>>, %arg3: memref<1x64xf32, #tpu.memory_space<vmem>>, %arg4: memref<64x32xf32, #tpu.memory_space<vmem>>, %arg5: memref<1x32xf32, #tpu.memory_space<vmem>>, %arg6: memref<32x10xf32, #tpu.memory_space<vmem>>, %arg7: memref<1x10xf32, #tpu.memory_space<vmem>>, %arg8: memref<8x10xf32, #tpu.memory_space<vmem>>) attributes {dimension_semantics = [#tpu.dimension_semantics<parallel>], iteration_bounds = array<i64: 1>, scalar_prefetch = 0 : i64, scratch_operands = 0 : i64, tpu.core_type = #tpu.core_type<tc>, window_params = [{transform_indices = @transform_0, window_bounds = array<i64: 8, 32, 169>}, {pipeline_mode = #tpu.pipeline_mode<synchronous>, transform_indices = @transform_1, window_bounds = array<i64: 32, 64>}, {pipeline_mode = #tpu.pipeline_mode<synchronous>, transform_indices = @transform_2, window_bounds = array<i64: 1, 64>}, {pipeline_mode = #tpu.pipeline_mode<synchronous>, transform_indices = @transform_3, window_bounds = array<i64: 64, 32>}, {pipeline_mode = #tpu.pipeline_mode<synchronous>, transform_indices = @transform_4, window_bounds = array<i64: 1, 32>}, {pipeline_mode = #tpu.pipeline_mode<synchronous>, transform_indices = @transform_5, window_bounds = array<i64: 32, 10>}, {pipeline_mode = #tpu.pipeline_mode<synchronous>, transform_indices = @transform_6, window_bounds = array<i64: 1, 10>}, {transform_indices = @transform_7, window_bounds = array<i64: 8, 10>}]} {
    %c0 = arith.constant 0 : index
    %c0_0 = arith.constant 0 : index
    %c0_1 = arith.constant 0 : index
    %0 = vector.load %arg1[%c0, %c0_0, %c0_1] : memref<8x32x169xf32, #tpu.memory_space<vmem>>, vector<8x32x169xf32>
    %cst = arith.constant dense<0.000000e+00> : vector<8x32xf32>
    %1 = vector.multi_reduction <add>, %0, %cst [2] : vector<8x32x169xf32> to vector<8x32xf32>
    %cst_2 = arith.constant 1.690000e+02 : f32
    %2 = vector.broadcast %cst_2 : f32 to vector<8x32xf32>
    %3 = arith.divf %1, %2 : vector<8x32xf32>
    %c0_3 = arith.constant 0 : index
    %c0_4 = arith.constant 0 : index
    %4 = vector.load %arg2[%c0_3, %c0_4] : memref<32x64xf32, #tpu.memory_space<vmem>>, vector<32x64xf32>
    %cst_5 = arith.constant dense<0.000000e+00> : vector<8x64xf32>
    %5 = tpu.matmul %3, %4, %cst_5 {dimension_numbers = #tpu.dot_dimension_numbers<[1], [0], [0], [1], [0, 0, 1, 1], [], []>} : vector<8x32xf32>, vector<32x64xf32>, vector<8x64xf32> -> vector<8x64xf32>
    %c0_6 = arith.constant 0 : index
    %c0_7 = arith.constant 0 : index
    %6 = vector.load %arg3[%c0_6, %c0_7] : memref<1x64xf32, #tpu.memory_space<vmem>>, vector<1x64xf32>
    %7 = vector.broadcast %6 : vector<1x64xf32> to vector<8x64xf32>
    %8 = arith.addf %5, %7 : vector<8x64xf32>
    %cst_8 = arith.constant 0.000000e+00 : f32
    %9 = vector.broadcast %cst_8 : f32 to vector<8x64xf32>
    %10 = arith.maximumf %8, %9 : vector<8x64xf32>
    %c0_9 = arith.constant 0 : index
    %c0_10 = arith.constant 0 : index
    %11 = vector.load %arg4[%c0_9, %c0_10] : memref<64x32xf32, #tpu.memory_space<vmem>>, vector<64x32xf32>
    %cst_11 = arith.constant dense<0.000000e+00> : vector<8x32xf32>
    %12 = tpu.matmul %10, %11, %cst_11 {dimension_numbers = #tpu.dot_dimension_numbers<[1], [0], [0], [1], [0, 0, 1, 1], [], []>} : vector<8x64xf32>, vector<64x32xf32>, vector<8x32xf32> -> vector<8x32xf32>
    %c0_12 = arith.constant 0 : index
    %c0_13 = arith.constant 0 : index
    %13 = vector.load %arg5[%c0_12, %c0_13] : memref<1x32xf32, #tpu.memory_space<vmem>>, vector<1x32xf32>
    %14 = vector.broadcast %13 : vector<1x32xf32> to vector<8x32xf32>
    %15 = arith.addf %12, %14 : vector<8x32xf32>
    %cst_14 = arith.constant 0.000000e+00 : f32
    %16 = vector.broadcast %cst_14 : f32 to vector<8x32xf32>
    %17 = arith.maximumf %15, %16 : vector<8x32xf32>
    %c0_15 = arith.constant 0 : index
    %c0_16 = arith.constant 0 : index
    %18 = vector.load %arg6[%c0_15, %c0_16] : memref<32x10xf32, #tpu.memory_space<vmem>>, vector<32x10xf32>
    %cst_17 = arith.constant dense<0.000000e+00> : vector<8x10xf32>
    %19 = tpu.matmul %17, %18, %cst_17 {dimension_numbers = #tpu.dot_dimension_numbers<[1], [0], [0], [1], [0, 0, 1, 1], [], []>} : vector<8x32xf32>, vector<32x10xf32>, vector<8x10xf32> -> vector<8x10xf32>
    %c0_18 = arith.constant 0 : index
    %c0_19 = arith.constant 0 : index
    %20 = vector.load %arg7[%c0_18, %c0_19] : memref<1x10xf32, #tpu.memory_space<vmem>>, vector<1x10xf32>
    %21 = vector.broadcast %20 : vector<1x10xf32> to vector<8x10xf32>
    %22 = arith.addf %19, %21 : vector<8x10xf32>
    %cst_20 = arith.constant dense<0xFF800000> : vector<8xf32>
    %23 = vector.multi_reduction <maximumf>, %22, %cst_20 [1] : vector<8x10xf32> to vector<8xf32>
    %24 = vector.shape_cast %23 : vector<8xf32> to vector<8x1xf32>
    %25 = vector.broadcast %24 : vector<8x1xf32> to vector<8x10xf32>
    %26 = arith.subf %22, %25 : vector<8x10xf32>
    %27 = math.exp %26 : vector<8x10xf32>
    %cst_21 = arith.constant dense<0.000000e+00> : vector<8xf32>
    %28 = vector.multi_reduction <add>, %27, %cst_21 [1] : vector<8x10xf32> to vector<8xf32>
    %29 = vector.shape_cast %28 : vector<8xf32> to vector<8x1xf32>
    %30 = math.log %29 : vector<8x1xf32>
    %31 = vector.broadcast %30 : vector<8x1xf32> to vector<8x10xf32>
    %32 = arith.subf %26, %31 : vector<8x10xf32>
    %c0_22 = arith.constant 0 : index
    %c0_23 = arith.constant 0 : index
    %33 = vector.load %arg8[%c0_22, %c0_23] : memref<8x10xf32, #tpu.memory_space<vmem>>, vector<8x10xf32>
    tpu.vector_store %arg8[%c0_22, %c0_23], %32 {strides = array<i32>} : memref<8x10xf32, #tpu.memory_space<vmem>>, vector<8x10xf32>,
    return
  }
  func.func @transform_0(%arg0: i32) -> (i32, i32, i32) {
    %c0_i32 = arith.constant 0 : i32
    %c0_i32_0 = arith.constant 0 : i32
    %c0_i32_1 = arith.constant 0 : i32
    return %arg0, %c0_i32, %c0_i32_0 : i32, i32, i32
  }
  func.func @transform_1(%arg0: i32) -> (i32, i32) {
    %c0_i32 = arith.constant 0 : i32
    %c0_i32_0 = arith.constant 0 : i32
    %c0_i32_1 = arith.constant 0 : i32
    return %c0_i32, %c0_i32_0 : i32, i32
  }
  func.func @transform_2(%arg0: i32) -> (i32, i32) {
    %c0_i32 = arith.constant 0 : i32
    %c0_i32_0 = arith.constant 0 : i32
    %c0_i32_1 = arith.constant 0 : i32
    return %c0_i32, %c0_i32_0 : i32, i32
  }
  func.func @transform_3(%arg0: i32) -> (i32, i32) {
    %c0_i32 = arith.constant 0 : i32
    %c0_i32_0 = arith.constant 0 : i32
    %c0_i32_1 = arith.constant 0 : i32
    return %c0_i32, %c0_i32_0 : i32, i32
  }
  func.func @transform_4(%arg0: i32) -> (i32, i32) {
    %c0_i32 = arith.constant 0 : i32
    %c0_i32_0 = arith.constant 0 : i32
    %c0_i32_1 = arith.constant 0 : i32
    return %c0_i32, %c0_i32_0 : i32, i32
  }
  func.func @transform_5(%arg0: i32) -> (i32, i32) {
    %c0_i32 = arith.constant 0 : i32
    %c0_i32_0 = arith.constant 0 : i32
    %c0_i32_1 = arith.constant 0 : i32
    return %c0_i32, %c0_i32_0 : i32, i32
  }
  func.func @transform_6(%arg0: i32) -> (i32, i32) {
    %c0_i32 = arith.constant 0 : i32
    %c0_i32_0 = arith.constant 0 : i32
    %c0_i32_1 = arith.constant 0 : i32
    return %c0_i32, %c0_i32_0 : i32, i32
  }
  func.func @transform_7(%arg0: i32) -> (i32, i32) {
    %c0_i32 = arith.constant 0 : i32
    %c0_i32_0 = arith.constant 0 : i32
    return %arg0, %c0_i32 : i32, i32
  }
}

</mosaic_0001>

<bundles_post_ra>
// kernel: tpu_custom_call.1
= control target key start
LH: loop header
LB: loop body
LE: loop exit
PB: predicated region body
PF: predicated region fallthrough
CT: control target
= control target key end

     0   :  { %12 = vsyncpa [#allocation3], 0  ;;  %s1165_s0 = inlined_call_operand.hbm [shape: f32[8,32,169], index: 0, kind: input, shape index: {}]   ;;  %s1166_s1 = inlined_call_operand.vmem [shape: f32[32,64], index: 1, kind: input, shape index: {}]   ;;  %s1167_s2 = inlined_call_operand.vmem [shape: f32[1,64], index: 2, kind: input, shape index: {}]   ;;  %s1168_s3 = inlined_call_operand.vmem [shape: f32[64,32], index: 3, kind: input, shape index: {}]   ;;  %s1169_s4 = inlined_call_operand.vmem [shape: f32[1,32], index: 4, kind: input, shape index: {}]   ;;  %s1170_s5 = inlined_call_operand.vmem [shape: f32[32,10], index: 5, kind: input, shape index: {}]   ;;  %s1171_s6 = inlined_call_operand.vmem [shape: f32[1,10], index: 6, kind: input, shape index: {}]   ;;  %s1172_s7 = inlined_call_operand.hbm [shape: f32[8,10], index: 7, kind: output, shape index: {}]  }
   0x1   :  { %13 = vsyncpa [#allocation4], 0  ;;  %s910_s24 = smov [#allocation2]   ;;  %s862_s28 = scalar_lea.hbm %s1165_s0, 8192 }
   0x2   :  { %s19_s25 = sshll.u32 %s910_s24, 4  ;;  %p863_p0 = scmp.ne.s32.totalorder %s1165_s0, %s862_s28  ;;  %s20_s25 = int_to_ptr.vmem [resolvable:$true] %s19_s25 }
   0x3   :  { %p866_p1 = scmp.lt.u32.totalorder %s862_s28, %s1165_s0 }
   0x5   :  { %p868_p2 = pnand %p866_p1, %p863_p0 }
   0x7   :  { %871 = shalt.err (!%p868_p2)
}
   0x8   :  { %s872_s10 = scalar_lea.vmem %s20_s25, 8192  ;;  %p877_p4 = scmp.lt.s32.totalorder %s20_s25, %s20_s25 }
   0x9   :  { %p873_p3 = scmp.ne.s32.totalorder %s20_s25, %s872_s10  ;;  %p878_p5 = scmp.lt.s32.totalorder %s872_s10, %s872_s10 }
   0xb   :  { %p879_p6 = por %p878_p5, %p877_p4 }
   0xd   :  { %p880_p7 = pnand %p879_p6, %p873_p3 }
   0xf   :  { %883 = shalt.err (!%p880_p7)
}
  0x10   :  { %s911_s11 = smov 256   ;;  %s912_s12 = smov 16  }
  0x11   :  { %25 = dma.hbm_to_vmem [thread:$0]  %s1165_s0, 8192, %s20_s25, [#allocation3], %s911_s11, %s911_s11, %s912_s12  }
  0x12   :  { %906 = dma.done.wait [#allocation3], 8192  }
  0x13   :  { %907 = vsyncadd [#allocation3], 4294959104  ;;  %vm105_vm0 = vcmask 334848   ;;  %v49_v0 = vld [vmem:[#allocation2 + $0x40] sm:$0xff]  ;;  %v50_v1 = vld [vmem:[#allocation2 + $0x48] sm:$0xff]  ;;  %vm914_vm1 = vmmov 0  }
  0x14   :  { %v41_v2 = vld [vmem:[#allocation2] sm:$0xff]  ;;  %v122_v3 = vsel %vm105_vm0, %v50_v1, 0.0  ;;  %v42_v4 = vld [vmem:[#allocation2 + $0x8] sm:$0xff]  ;;  %v51_v5 = vld [vmem:[#allocation2 + $0x50] sm:$0xff]  ;;  %vm321_vm2 = vcmask 130112   ;;  %vm328_vm3 = vcmask 195712  }
  0x15   :  { %v52_v6 = vld [vmem:[#allocation2 + $0x58] sm:$0xff]  ;;  %v123_v7 = vadd.f32 %v122_v3, %v49_v0  ;;  %v106_v8 = vsel %vm105_vm0, %v42_v4, 0.0  ;;  %v43_v10 = vld [vmem:[#allocation2 + $0x10] sm:$0xff]  ;;  %v54_v14 = vld [vmem:[#allocation2 + $0x68] sm:$0xff]  ;;  %vm335_vm4 = vcmask 261312   ;;  %vm470_vm5 = vcmask 1041409  }
  0x16   :  { %v126_v9 = vsel %vm105_vm0, %v52_v6, 0.0  ;;  %v44_v11 = vld [vmem:[#allocation2 + $0x18] sm:$0xff]  ;;  %v107_v12 = vadd.f32 %v106_v8, %v41_v2  ;;  %v46_v15 = vld [vmem:[#allocation2 + $0x28] sm:$0xff]  ;;  %v53_v18 = vld [vmem:[#allocation2 + $0x60] sm:$0xff]  ;;  %v130_v19 = vsel %vm105_vm0, %v54_v14, 0.0  ;;  %vm472_vm6 = vcmask 1042434  }
  0x17   :  { %v110_v13 = vsel %vm105_vm0, %v44_v11, 0.0  ;;  %124 = vadd.xlane.f32.xlu1 %v123_v7  ;;  %v127_v16 = vadd.f32 %v126_v9, %v51_v5  ;;  %v45_v20 = vld [vmem:[#allocation2 + $0x20] sm:$0xff]  ;;  %v114_v21 = vsel %vm105_vm0, %v46_v15, 0.0  ;;  %v60_v22 = vld [vmem:[#allocation2 + $0x98] sm:$0xff]  ;;  %v58_v23 = vld [vmem:[#allocation2 + $0x88] sm:$0xff]  ;;  %v131_v24 = vadd.f32 %v130_v19, %v53_v18 }
  0x18   :  { %108 = vadd.xlane.f32.xlu0 %v107_v12  ;;  %v111_v17 = vadd.f32 %v110_v13, %v43_v10  ;;  %v115_v25 = vadd.f32 %v114_v21, %v45_v20  ;;  %v59_v26 = vld [vmem:[#allocation2 + $0x90] sm:$0xff]  ;;  %v142_v27 = vsel %vm105_vm0, %v60_v22, 0.0  ;;  %v57_v28 = vld [vmem:[#allocation2 + $0x80] sm:$0xff]  ;;  %v138_v29 = vsel %vm105_vm0, %v58_v23, 0.0  ;;  %v56_v30 = vld [vmem:[#allocation2 + $0x78] sm:$0xff] }
  0x19   :  { %v48_v31 = vld [vmem:[#allocation2 + $0x38] sm:$0xff]  ;;  %v143_v32 = vadd.f32 %v142_v27, %v59_v26  ;;  %v139_v33 = vadd.f32 %v138_v29, %v57_v28  ;;  %v55_v34 = vld [vmem:[#allocation2 + $0x70] sm:$0xff]  ;;  %v134_v35 = vsel %vm105_vm0, %v56_v30, 0.0  ;;  %v66_v38 = vld [vmem:[#allocation2 + $0xc8] sm:$0xff]  ;;  %vm474_vm7 = vcmask 1043459  }
  0x1a   :  { %v47_v36 = vld [vmem:[#allocation2 + $0x30] sm:$0xff]  ;;  %v118_v37 = vsel %vm105_vm0, %v48_v31, 0.0  ;;  %v62_v39 = vld [vmem:[#allocation2 + $0xa8] sm:$0xff]  ;;  %v135_v40 = vadd.f32 %v134_v35, %v55_v34  ;;  %v65_v42 = vld [vmem:[#allocation2 + $0xc0] sm:$0xff]  ;;  %v154_v43 = vsel %vm105_vm0, %v66_v38, 0.0  ;;  %vm476_vm8 = vcmask 1044484  }
  0x1b   :  { %128 = vadd.xlane.f32.xlu1 %v127_v16  ;;  %v119_v41 = vadd.f32 %v118_v37, %v47_v36  ;;  %v61_v44 = vld [vmem:[#allocation2 + $0xa0] sm:$0xff]  ;;  %v146_v45 = vsel %vm105_vm0, %v62_v39, 0.0  ;;  %v64_v46 = vld [vmem:[#allocation2 + $0xb8] sm:$0xff]  ;;  %v155_v48 = vadd.f32 %v154_v43, %v65_v42  ;;  %v63_v50 = vld [vmem:[#allocation2 + $0xb0] sm:$0xff]  ;;  %vm478_vm9 = vcmask 1045509  }
  0x1c   :  { %112 = vadd.xlane.f32.xlu0 %v111_v17  ;;  %v68_v47 = vld [vmem:[#allocation2 + $0xd8] sm:$0xff]  ;;  %v147_v49 = vadd.f32 %v146_v45, %v61_v44  ;;  %v150_v51 = vsel %vm105_vm0, %v64_v46, 0.0  ;;  %v67_v52 = vld [vmem:[#allocation2 + $0xd0] sm:$0xff]  ;;  %v74_v54 = vld [vmem:[#allocation2 + $0x108] sm:$0xff]  ;;  %vm480_vm10 = vcmask 1046534   ;;  %vm482_vm11 = vcmask 1047559  }
  0x1d   :  { %v158_v53 = vsel %vm105_vm0, %v68_v47, 0.0  ;;  %v70_v55 = vld [vmem:[#allocation2 + $0xe8] sm:$0xff]  ;;  %v151_v56 = vadd.f32 %v150_v51, %v63_v50  ;;  %v73_v58 = vld [vmem:[#allocation2 + $0x100] sm:$0xff]  ;;  %v170_v59 = vsel %vm105_vm0, %v74_v54, 0.0  ;;  %v72_v62 = vld [vmem:[#allocation2 + $0xf8] sm:$0xff]  ;;  %vm484_vm12 = vcmask 261120  }
  0x1e   :  { %v159_v57 = vadd.f32 %v158_v53, %v67_v52  ;;  %v69_v60 = vld [vmem:[#allocation2 + $0xe0] sm:$0xff]  ;;  %v162_v61 = vsel %vm105_vm0, %v70_v55, 0.0  ;;  %v76_v63 = vld [vmem:[#allocation2 + $0x118] sm:$0xff]  ;;  %v171_v0 = vadd.f32 %v170_v59, %v73_v58  ;;  %v71_v2 = vld [vmem:[#allocation2 + $0xf0] sm:$0xff]  ;;  %v166_v3 = vsel %vm105_vm0, %v72_v62, 0.0 }
  0x1f   :  { %132 = vadd.xlane.f32.xlu1 %v131_v24  ;;  %v163_v1 = vadd.f32 %v162_v61, %v69_v60  ;;  %v75_v4 = vld [vmem:[#allocation2 + $0x110] sm:$0xff]  ;;  %v174_v5 = vsel %vm105_vm0, %v76_v63, 0.0  ;;  %v82_v6 = vld [vmem:[#allocation2 + $0x148] sm:$0xff]  ;;  %v167_v8 = vadd.f32 %v166_v3, %v71_v2  ;;  %v81_v10 = vld [vmem:[#allocation2 + $0x140] sm:$0xff]  ;;  %v913_v3 = vmov 0.0|0.0  }
  0x20   :  { %116 = vadd.xlane.f32.xlu0 %v115_v25  ;;  %v78_v7 = vld [vmem:[#allocation2 + $0x128] sm:$0xff]  ;;  %v175_v9 = vadd.f32 %v174_v5, %v75_v4  ;;  %v186_v11 = vsel %vm105_vm0, %v82_v6, 0.0  ;;  %v77_v12 = vld [vmem:[#allocation2 + $0x120] sm:$0xff]  ;;  %v80_v14 = vld [vmem:[#allocation2 + $0x138] sm:$0xff]  ;;  %827 = vmatprep.subr.bf16.mxu0 %v913_v3  ;;  %vm573_vm13 = vcmask 523264   ;;  %vm732_vm14 = vcmask 80896  }
  0x21   :  { %v178_v13 = vsel %vm105_vm0, %v78_v7, 0.0  ;;  %v84_v15 = vld [vmem:[#allocation2 + $0x158] sm:$0xff]  ;;  %v187_v16 = vadd.f32 %v186_v11, %v81_v10  ;;  %v79_v18 = vld [vmem:[#allocation2 + $0x130] sm:$0xff]  ;;  %v182_v19 = vsel %vm105_vm0, %v80_v14, 0.0  ;;  %v90_v22 = vld [vmem:[#allocation2 + $0x188] sm:$0xff]  ;;  %833 = vmatprep.subr.bf16.mxu1 %v913_v3  ;;  %v915_v7 = vmov 0.0  }
  0x22   :  { %v179_v17 = vadd.f32 %v178_v13, %v77_v12  ;;  %v83_v20 = vld [vmem:[#allocation2 + $0x150] sm:$0xff]  ;;  %v190_v21 = vsel %vm105_vm0, %v84_v15, 0.0  ;;  %v86_v23 = vld [vmem:[#allocation2 + $0x168] sm:$0xff]  ;;  %v183_v24 = vadd.f32 %v182_v19, %v79_v18  ;;  %v89_v26 = vld [vmem:[#allocation2 + $0x180] sm:$0xff]  ;;  %v202_v27 = vsel %vm105_vm0, %v90_v22, 0.0  ;;  %794 = vmatprep.mubr.msk.f32.mxu0 %vm914_vm1, %v915_v7  ;;  %813 = vmatprep.mubr.msk.f32.mxu1 %vm914_vm1, %v915_v7 }
  0x23   :  { %144 = vadd.xlane.f32.xlu1 %v143_v32  ;;  %v191_v25 = vadd.f32 %v190_v21, %v83_v20  ;;  %v85_v28 = vld [vmem:[#allocation2 + $0x160] sm:$0xff]  ;;  %v194_v29 = vsel %vm105_vm0, %v86_v23, 0.0  ;;  %v88_v30 = vld [vmem:[#allocation2 + $0x178] sm:$0xff]  ;;  %v203_v32 = vadd.f32 %v202_v27, %v89_v26  ;;  %v87_v34 = vld [vmem:[#allocation2 + $0x170] sm:$0xff] }
  0x24   :  { %140 = vadd.xlane.f32.xlu0 %v139_v33  ;;  %v92_v31 = vld [vmem:[#allocation2 + $0x198] sm:$0xff]  ;;  %v195_v33 = vadd.f32 %v194_v29, %v85_v28  ;;  %v198_v35 = vsel %vm105_vm0, %v88_v30, 0.0  ;;  %v91_v36 = vld [vmem:[#allocation2 + $0x190] sm:$0xff]  ;;  %v98_v38 = vld [vmem:[#allocation2 + $0x1c8] sm:$0xff] }
  0x25   :  { %v206_v37 = vsel %vm105_vm0, %v92_v31, 0.0  ;;  %v94_v39 = vld [vmem:[#allocation2 + $0x1a8] sm:$0xff]  ;;  %v97_v42 = vld [vmem:[#allocation2 + $0x1c0] sm:$0xff]  ;;  %v218_v43 = vsel %vm105_vm0, %v98_v38, 0.0  ;;  %v96_v46 = vld [vmem:[#allocation2 + $0x1b8] sm:$0xff] }
  0x26   :  { %v93_v44 = vld [vmem:[#allocation2 + $0x1a0] sm:$0xff]  ;;  %v210_v45 = vsel %vm105_vm0, %v94_v39, 0.0  ;;  %v100_v47 = vld [vmem:[#allocation2 + $0x1d8] sm:$0xff]  ;;  %v95_v50 = vld [vmem:[#allocation2 + $0x1b0] sm:$0xff]  ;;  %v214_v51 = vsel %vm105_vm0, %v96_v46, 0.0 }
  0x27   :  { %136 = vadd.xlane.f32.xlu1 %v135_v40  ;;  %v199_v40 = vadd.f32 %v198_v35, %v87_v34  ;;  %v99_v52 = vld [vmem:[#allocation2 + $0x1d0] sm:$0xff]  ;;  %v222_v53 = vsel %vm105_vm0, %v100_v47, 0.0  ;;  %v104_v54 = vld [vmem:[#allocation2 + $0x1f8] sm:$0xff]  ;;  %v102_v55 = vld [vmem:[#allocation2 + $0x1e8] sm:$0xff] }
  0x28   :  { %120 = vadd.xlane.f32.xlu0 %v119_v41  ;;  %v207_v41 = vadd.f32 %v206_v37, %v91_v36  ;;  %v103_v58 = vld [vmem:[#allocation2 + $0x1f0] sm:$0xff]  ;;  %v230_v59 = vsel %vm105_vm0, %v104_v54, 0.0  ;;  %v101_v60 = vld [vmem:[#allocation2 + $0x1e0] sm:$0xff]  ;;  %v226_v61 = vsel %vm105_vm0, %v102_v55, 0.0  ;;  %v270_v5 = vld [vmem:[%s1166_s1 + $0x18] sm:$0xff] }
  0x29   :  { %v231_v62 = vadd.f32 %v230_v59, %v103_v58  ;;  %v227_v63 = vadd.f32 %v226_v61, %v101_v60  ;;  %v269_v4 = vld [vmem:[%s1166_s1 + $0x10] sm:$0xff]  ;;  %v561_v12 = vld [vmem:[%s1168_s3 + $0x18] sm:$0xff]  ;;  %v562_v14 = vld [vmem:[%s1168_s3 + $0x20] sm:$0xff] }
  0x2a   :  { %v831_v6 = vpack.c.bf16 %v270_v5, %v269_v4  ;;  %v560_v10 = vld [vmem:[%s1168_s3 + $0x10] sm:$0xff]  ;;  %v563_v15 = vld [vmem:[%s1168_s3 + $0x28] sm:$0xff] }
  0x2b   :  { %156 = vadd.xlane.f32.xlu1 %v155_v48  ;;  %v219_v48 = vadd.f32 %v218_v43, %v97_v42  ;;  %v837_v13 = vpack.c.bf16 %v561_v12, %v560_v10 }
  0x2c   :  { %148 = vadd.xlane.f32.xlu0 %v147_v49  ;;  %v211_v49 = vadd.f32 %v210_v45, %v93_v44 }
  0x2f   :  { %152 = vadd.xlane.f32.xlu1 %v151_v56  ;;  %v215_v56 = vadd.f32 %v214_v51, %v95_v50 }
  0x30   :  { %160 = vadd.xlane.f32.xlu0 %v159_v57  ;;  %v223_v57 = vadd.f32 %v222_v53, %v99_v52 }
  0x33   :  { %172 = vadd.xlane.f32.xlu1 %v171_v0  ;;  %v267_v0 = vld [vmem:[%s1166_s1] sm:$0xff] }
  0x34   :  { %164 = vadd.xlane.f32.xlu0 %v163_v1  ;;  %v268_v1 = vld [vmem:[%s1166_s1 + $0x8] sm:$0xff] }
  0x35   :  { %v828_v2 = vpack.c.bf16 %v268_v1, %v267_v0 }
  0x37   :  { %168 = vadd.xlane.f32.xlu1 %v167_v8  ;;  %829 = vmatpush3.bf16.msra.mxu0 %v828_v2  ;;  %v558_v8 = vld [vmem:[%s1168_s3] sm:$0xff] }
  0x38   :  { %176 = vadd.xlane.f32.xlu0 %v175_v9  ;;  %830 = vmatprep.subr.bf16.mxu0 %v913_v3  ;;  %v559_v9 = vld [vmem:[%s1168_s3 + $0x8] sm:$0xff] }
  0x39   :  { %v834_v11 = vpack.c.bf16 %v559_v9, %v558_v8 }
  0x3b   :  { %188 = vadd.xlane.f32.xlu1 %v187_v16  ;;  %832 = vmatpush3.bf16.msra.mxu0 %v831_v6  ;;  %v840_v16 = vpack.c.bf16 %v563_v15, %v562_v14 }
  0x3c   :  { %180 = vadd.xlane.f32.xlu0 %v179_v17  ;;  %845 = vmatprep.subr.bf16.mxu0 %v913_v3 }
  0x3d   :  { %835 = vmatpush3.bf16.msra.mxu1 %v834_v11 }
  0x3e   :  { %836 = vmatprep.subr.bf16.mxu1 %v913_v3 }
  0x3f   :  { %184 = vadd.xlane.f32.xlu1 %v183_v24 }
  0x40   :  { %192 = vadd.xlane.f32.xlu0 %v191_v25 }
  0x41   :  { %838 = vmatpush3.bf16.msra.mxu1 %v837_v13 }
  0x42   :  { %839 = vmatprep.subr.bf16.mxu1 %v913_v3 }
  0x43   :  { %204 = vadd.xlane.f32.xlu1 %v203_v32  ;;  %v310_v32 = vlaneseq }
  0x44   :  { %196 = vadd.xlane.f32.xlu0 %v195_v33 }
  0x45   :  { %841 = vmatpush3.bf16.msra.mxu1 %v840_v16  ;;  %v311_v35 = vand.u32 127, %v310_v32  ;;  %v313_v37 = vshrl.u32 %v310_v32, 7 }
  0x46   :  { %842 = vmatprep.subr.bf16.mxu1 %v913_v3 }
  0x47   :  { %200 = vadd.xlane.f32.xlu1 %v199_v40  ;;  %v316_v38 = vadd.s32 4294967288, %v311_v35  ;;  %v323_v39 = vadd.s32 4294967280, %v311_v35  ;;  %v1048_v43 = vsub.s32 %v311_v35, %v313_v37 }
  0x48   :  { %208 = vadd.xlane.f32.xlu0 %v207_v41  ;;  %v330_v41 = vadd.s32 4294967272, %v311_v35 }
  0x49   :  { %v1050_v45 = vsub.s32 %v316_v38, %v313_v37 }
  0x4a   :  { %v1054_v55 = vsub.s32 %v330_v41, %v313_v37 }
  0x4b   :  { %220 = vadd.xlane.f32.xlu1 %v219_v48 }
  0x4c   :  { %212 = vadd.xlane.f32.xlu0 %v211_v49  ;;  %v1052_v49 = vsub.s32 %v323_v39, %v313_v37 }
  0x4f   :  { %216 = vadd.xlane.f32.xlu1 %v215_v56 }
  0x50   :  { %224 = vadd.xlane.f32.xlu0 %v223_v57 }
  0x53   :  { %232 = vadd.xlane.f32.xlu1 %v231_v62 }
  0x54   :  { %228 = vadd.xlane.f32.xlu0 %v227_v63 }
  0xa4   :  { %v125_v17 = vpop.xlane.xlu1 %124 }
  0xa5   :  { %v109_v18 = vpop.xlane.xlu0 %108  ;;  %v239_v44 = vmul.f32 0.00591716, %v125_v17 }
  0xa6   :  { %v235_v54 = vmul.f32 0.00591716, %v109_v18 }
  0xa7   :  { %v340_v5 = vrot.slane %v239_v44, %v1048_v43 }
  0xa8   :  { %v129_v19 = vpop.xlane.xlu1 %128  ;;  %v315_v6 = vrot.slane %v235_v54, %v1048_v43 }
  0xa9   :  { %v113_v20 = vpop.xlane.xlu0 %112  ;;  %v240_v46 = vmul.f32 0.00591716, %v129_v19 }
  0xaa   :  { %v236_v47 = vmul.f32 0.00591716, %v113_v20 }
  0xab   :  { %v344_v60 = vrot.slane %v240_v46, %v1050_v45 }
  0xac   :  { %v133_v21 = vpop.xlane.xlu1 %132  ;;  %v320_v61 = vrot.slane %v236_v47, %v1050_v45 }
  0xad   :  { %v117_v22 = vpop.xlane.xlu0 %116  ;;  %v241_v48 = vmul.f32 0.00591716, %v133_v21  ;;  %v345_v12 = vsel %vm321_vm2, %v344_v60, %v340_v5 }
  0xae   :  { %v237_v50 = vmul.f32 0.00591716, %v117_v22  ;;  %v322_v13 = vsel %vm321_vm2, %v320_v61, %v315_v6 }
  0xaf   :  { %v349_v63 = vrot.slane %v241_v48, %v1052_v49 }
  0xb0   :  { %v145_v23 = vpop.xlane.xlu1 %144  ;;  %v327_v0 = vrot.slane %v237_v50, %v1052_v49 }
  0xb1   :  { %v141_v24 = vpop.xlane.xlu0 %140  ;;  %v244_v51 = vmul.f32 0.00591716, %v145_v23  ;;  %v350_v16 = vsel %vm328_vm3, %v349_v63, %v345_v12 }
  0xb2   :  { %v243_v52 = vmul.f32 0.00591716, %v141_v24  ;;  %v329_v17 = vsel %vm328_vm3, %v327_v0, %v322_v13 }
  0xb3   :  { %v363_v1 = vrot.slane %v244_v51, %v1050_v45 }
  0xb4   :  { %v137_v25 = vpop.xlane.xlu1 %136  ;;  %v359_v2 = vrot.slane %v243_v52, %v1048_v43 }
  0xb5   :  { %v121_v26 = vpop.xlane.xlu0 %120  ;;  %v242_v56 = vmul.f32 0.00591716, %v137_v25 }
  0xb6   :  { %v238_v57 = vmul.f32 0.00591716, %v121_v26  ;;  %v364_v18 = vsel %vm321_vm2, %v363_v1, %v359_v2 }
  0xb7   :  { %v354_v8 = vrot.slane %v242_v56, %v1054_v55 }
  0xb8   :  { %v157_v27 = vpop.xlane.xlu1 %156  ;;  %v334_v9 = vrot.slane %v238_v57, %v1054_v55 }
  0xb9   :  { %v149_v28 = vpop.xlane.xlu0 %148  ;;  %v355_v20 = vsel %vm335_vm4, %v354_v8, %v350_v16  ;;  %v247_v22 = vmul.f32 0.00591716, %v157_v27 }
  0xba   :  { %v245_v59 = vmul.f32 0.00591716, %v149_v28  ;;  %v336_v21 = vsel %vm335_vm4, %v334_v9, %v329_v17 }
  0xbb   :  { %v378_v38 = vrot.slane %v247_v22, %v1048_v43 }
  0xbc   :  { %v153_v29 = vpop.xlane.xlu1 %152  ;;  %v368_v11 = vrot.slane %v245_v59, %v1052_v49 }
  0xbd   :  { %v161_v30 = vpop.xlane.xlu0 %160  ;;  %v246_v62 = vmul.f32 0.00591716, %v153_v29  ;;  %v471_v29 = vsel %vm470_vm5, %v355_v20, %v336_v21 }
  0xbe   :  { %v248_v15 = vmul.f32 0.00591716, %v161_v30  ;;  %v369_v25 = vsel %vm328_vm3, %v368_v11, %v364_v18 }
  0xbf   :  { %v373_v14 = vrot.slane %v246_v62, %v1054_v55 }
  0xc0   :  { %v1042_v31 = vpop.xlane.xlu1 %172  ;;  %v382_v28 = vrot.slane %v248_v15, %v1050_v45 }
  0xc1   :  { %v165_v33 = vpop.xlane.xlu0 %164  ;;  %v374_v26 = vsel %vm335_vm4, %v373_v14, %v369_v25  ;;  %v251_v30 = vmul.f32 0.00591716, %v1042_v31 }
  0xc2   :  { %v249_v23 = vmul.f32 0.00591716, %v165_v33  ;;  %v473_v44 = vsel %vm472_vm6, %v374_v26, %v471_v29  ;;  %v383_v50 = vsel %vm321_vm2, %v382_v28, %v378_v38  ;;  %v648_v38 = vld [vmem:[%s1170_s5] sm:$0xff] }
  0xc3   :  { %v397_v51 = vrot.slane %v251_v30, %v1048_v43 }
  0xc4   :  { %v1044_v34 = vpop.xlane.xlu1 %168  ;;  %v387_v27 = vrot.slane %v249_v23, %v1052_v49 }
  0xc5   :  { %v177_v36 = vpop.xlane.xlu0 %176  ;;  %v250_v32 = vmul.f32 0.00591716, %v1044_v34 }
  0xc6   :  { %v252_v35 = vmul.f32 0.00591716, %v177_v36  ;;  %v388_v57 = vsel %vm328_vm3, %v387_v27, %v383_v50  ;;  %v649_v27 = vld [vmem:[%s1170_s5 + $0x8] sm:$0xff] }
  0xc7   :  { %v392_v52 = vrot.slane %v250_v32, %v1054_v55 }
  0xc8   :  { %v1046_v40 = vpop.xlane.xlu1 %188 }
  0xc9   :  { %v181_v42 = vpop.xlane.xlu0 %180  ;;  %v255_v31 = vmul.f32 0.00591716, %v1046_v40  ;;  %v393_v5 = vsel %vm335_vm4, %v392_v52, %v388_v57  ;;  %v765_v52 = vld [vmem:[%s1171_s6] ss:$0 sm:$0xff] }
  0xca   :  { %v253_v33 = vmul.f32 0.00591716, %v181_v42  ;;  %v401_v42 = vrot.slane %v252_v35, %v1050_v45  ;;  %v565_v35 = vld [vmem:[%s1168_s3 + $0x38] sm:$0xff] }
  0xcb   :  { %v416_v0 = vrot.slane %v255_v31, %v1048_v43 }
  0xcc   :  { %v185_v53 = vpop.xlane.xlu1 %184  ;;  %v402_v6 = vsel %vm321_vm2, %v401_v42, %v397_v51 }
  0xcd   :  { %v193_v58 = vpop.xlane.xlu0 %192  ;;  %v254_v46 = vmul.f32 0.00591716, %v185_v53  ;;  %v406_v53 = vrot.slane %v253_v33, %v1052_v49  ;;  %v846_v33 = vpack.c.bf16 %v649_v27, %v648_v38 }
  0xce   :  { %v256_v39 = vmul.f32 0.00591716, %v193_v58 }
  0xcf   :  { %v411_v40 = vrot.slane %v254_v46, %v1054_v55  ;;  %v407_v11 = vsel %vm328_vm3, %v406_v53, %v402_v6 }
  0xd0   :  { %v205_v4 = vpop.xlane.xlu1 %204  ;;  %v420_v58 = vrot.slane %v256_v39, %v1050_v45 }
  0xd1   :  { %v197_v10 = vpop.xlane.xlu0 %196  ;;  %v259_v54 = vmul.f32 0.00591716, %v205_v4  ;;  %v412_v16 = vsel %vm335_vm4, %v411_v40, %v407_v11 }
  0xd2   :  { %v257_v47 = vmul.f32 0.00591716, %v197_v10  ;;  %v421_v12 = vsel %vm321_vm2, %v420_v58, %v416_v0 }
  0xd3   :  { %v435_v8 = vrot.slane %v259_v54, %v1048_v43 }
  0xd4   :  { %v201_v19 = vpop.xlane.xlu1 %200  ;;  %v425_v61 = vrot.slane %v257_v47, %v1052_v49  ;;  %v650_v47 = vld [vmem:[%s1170_s5 + $0x10] sm:$0xff] }
  0xd5   :  { %v209_v24 = vpop.xlane.xlu0 %208  ;;  %v258_v34 = vmul.f32 0.00591716, %v201_v19 }
  0xd6   :  { %v260_v48 = vmul.f32 0.00591716, %v209_v24  ;;  %v426_v17 = vsel %vm328_vm3, %v425_v61, %v421_v12  ;;  %v475_v24 = vsel %vm474_vm7, %v393_v5, %v473_v44 }
  0xd7   :  { %v430_v1 = vrot.slane %v258_v34, %v1054_v55  ;;  %v477_v26 = vsel %vm476_vm8, %v412_v16, %v475_v24 }
  0xd8   :  { %v221_v37 = vpop.xlane.xlu1 %220  ;;  %v439_v62 = vrot.slane %v260_v48, %v1050_v45  ;;  %v651_v48 = vld [vmem:[%s1170_s5 + $0x18] sm:$0xff] }
  0xd9   :  { %v213_v41 = vpop.xlane.xlu0 %212  ;;  %v263_v2 = vmul.f32 0.00591716, %v221_v37  ;;  %v431_v20 = vsel %vm335_vm4, %v430_v1, %v426_v17  ;;  %v849_v50 = vpack.c.bf16 %v651_v48, %v650_v47 }
  0xda   :  { %v261_v36 = vmul.f32 0.00591716, %v213_v41  ;;  %v440_v18 = vsel %vm321_vm2, %v439_v62, %v435_v8 }
  0xdb   :  { %v454_v21 = vrot.slane %v263_v2, %v1048_v43  ;;  %v479_v43 = vsel %vm478_vm9, %v431_v20, %v477_v26 }
  0xdc   :  { %v217_v56 = vpop.xlane.xlu1 %216  ;;  %v444_v4 = vrot.slane %v261_v36, %v1052_v49 }
  0xdd   :  { %v262_v59 = vmul.f32 0.00591716, %v217_v56  ;;  %v225_v60 = vpop.xlane.xlu0 %224 }
  0xde   :  { %v264_v63 = vmul.f32 0.00591716, %v225_v60  ;;  %v445_v22 = vsel %vm328_vm3, %v444_v4, %v440_v18 }
  0xdf   :  { %v449_v9 = vrot.slane %v262_v59, %v1054_v55 }
  0xe0   :  { %v233_v10 = vpop.xlane.xlu1 %232  ;;  %v458_v13 = vrot.slane %v264_v63, %v1050_v45 }
  0xe1   :  { %v229_v14 = vpop.xlane.xlu0 %228  ;;  %v266_v15 = vmul.f32 0.00591716, %v233_v10  ;;  %v450_v45 = vsel %vm335_vm4, %v449_v9, %v445_v22 }
  0xe2   :  { %v265_v19 = vmul.f32 0.00591716, %v229_v14  ;;  %v459_v28 = vsel %vm321_vm2, %v458_v13, %v454_v21 }
  0xe3   :  { %v468_v23 = vrot.slane %v266_v15, %v1054_v55  ;;  %v481_v55 = vsel %vm480_vm10, %v450_v45, %v479_v43 }
  0xe4   :  { %v463_v25 = vrot.slane %v265_v19, %v1052_v49  ;;  %v564_v49 = vld [vmem:[%s1168_s3 + $0x30] sm:$0xff] }
  0xe5   :  { %v843_v37 = vpack.c.bf16 %v565_v35, %v564_v49 }
  0xe6   :  { %v464_v29 = vsel %vm328_vm3, %v463_v25, %v459_v28 }
  0xe7   :  { %v469_v30 = vsel %vm335_vm4, %v468_v23, %v464_v29  ;;  %844 = vmatpush3.bf16.msra.mxu1 %v843_v37 }
  0xe8   :  { %v483_v32 = vsel %vm482_vm11, %v469_v30, %v481_v55 }
  0xe9   :  { %795 = vmatmul.mubr.msk.f32.vlgmr.msra.gmra.mrb[0].mxu0 %vm484_vm12, %v483_v32 }
  0xea   :  { %824 = vmatprep.mubr.msk.f32.mxu0 %vm914_vm1, %v915_v7  ;;  %847 = vmatpush3.bf16.msra.mxu0 %v846_v33  ;;  %v761_v7 = vld [vmem:[%s1167_s2] ss:$0 sm:$0xff] }
  0xeb   :  { %848 = vmatprep.subr.bf16.mxu0 %v913_v3  ;;  %v763_v3 = vld [vmem:[%s1169_s4] ss:$0 sm:$0xff]  ;;  %s916_s4 = smov [#allocation5]  }
  0xec   :  { %s752_s5 = sshll.u32 %s916_s4, 4  ;;  %s753_s5 = int_to_ptr.vmem [resolvable:$true] %s752_s5 }
  0xed   :  { %s884_s6 = scalar_lea.vmem %s753_s5, 128  ;;  %p889_p9 = scmp.lt.s32.totalorder %s753_s5, %s753_s5 }
  0xee   :  { %850 = vmatpush3.bf16.msra.mxu0 %v849_v50  ;;  %p885_p8 = scmp.ne.s32.totalorder %s753_s5, %s884_s6  ;;  %p890_p10 = scmp.lt.s32.totalorder %s884_s6, %s884_s6 }
  0xf0   :  { %p891_p11 = por %p890_p10, %p889_p9 }
  0xf2   :  { %p892_p12 = pnand %p891_p11, %p885_p8 }
 0x1bc   :  { %v553_v39 = vpop.f32.mrb[0].mxu0 }
 0x1bd   :  { %v554_v41 = vadd.f32 %v761_v7, %v553_v39  ;;  %v796_v44 = vpop.f32.mrb[1].mxu0 }
 0x1bf   :  { %v557_v46 = vmax.f32 %v554_v41, 0.0 }
 0x1c1   :  { %814 = vmatmul.mubr.msk.f32.vlgmr.msra.gmra.mrb[0].mxu1 %vm573_vm13, %v557_v46 }
 0x294   :  { %v643_v31 = vpop.f32.mrb[0].mxu1 }
 0x295   :  { %v644_v34 = vadd.f32 %v763_v3, %v643_v31  ;;  %v815_v36 = vpop.f32.mrb[1].mxu1 }
 0x297   :  { %v647_v51 = vmax.f32 %v644_v34, 0.0 }
 0x299   :  { %825 = vmatmul.mubr.msk.f32.vlgmr.msra.gmra.mrb[2].mxu0 %vm484_vm12, %v647_v51 }
 0x36c   :  { %v728_v42 = vpop.f32.mrb[2].mxu0 }
 0x36d   :  { %v729_v54 = vadd.f32 %v765_v52, %v728_v42  ;;  %v826_v56 = vpop.f32.mrb[3].mxu0 }
 0x36f   :  { %v733_v57 = vsel %vm732_vm14, %v729_v54, -inf }
 0x370   :  { %734 = vmax.xlane.f32.xlu0 %v733_v57 }
 0x3fd   :  { %v735_v53 = vpop.xlane.xlu0 %734 }
 0x3fe   :  { %v736_v58 = vsub.f32 %v729_v54, %v735_v53 }
 0x400   :  { %v737_v59 = vmul.f32 1.442695, %v736_v58 }
 0x402   :  { %858 = vpow2.f32 %v737_v59 }
 0x40c   :  { %v859_v60 = vpop.eup %858 }
 0x40d   :  { %v739_v40 = vsel %vm732_vm14, %v859_v60, 0.0 }
 0x40e   :  { %740 = vadd.xlane.f32.xlu1 %v739_v40 }
 0x49b   :  { %v741_v61 = vpop.xlane.xlu1 %740 }
 0x49c   :  { %860 = vlog2.f32 %v741_v61 }
 0x4a6   :  { %v861_v62 = vpop.eup %860 }
 0x4a7   :  { %v743_v63 = vmul.f32 0.6931472, %v861_v62 }
 0x4a9   :  { %v744_v0 = vsub.f32 %v736_v58, %v743_v63 }
 0x4ab   :  { %745 = vst.msk [vmem:[#allocation5] sm:$0xff] %vm732_vm14, %v744_v0 }
 0x4ac   :  { %895 = shalt.err (!%p892_p12)
}
 0x4ad   :  { %s896_s26 = scalar_lea.hbm %s1172_s7, 128 }
 0x4ae   :  { %p897_p13 = scmp.ne.s32.totalorder %s1172_s7, %s896_s26  ;;  %p900_p0 = scmp.lt.u32.totalorder %s896_s26, %s1172_s7 }
 0x4b0   :  { %p902_p1 = pnand %p900_p0, %p897_p13 }
 0x4b2   :  { %905 = shalt.err (!%p902_p1)
}
 0x4b3   :  { %755 = dma.vmem_to_hbm [thread:$0]  %s753_s5, 128, %s1172_s7, [#allocation4]  }
 0x4b4   :  { %908 = dma.done.wait [#allocation4], 128  }
 0x4b5   :  { %909 = vsyncadd [#allocation4], 4294967168 }
 0x4b6   :  { %759 = vsyncpa [#allocation3], 1 }
 0x4b7   :  { %760 = vsyncpa [#allocation4], 1 }

</bundles_post_ra>
